<compile_context>
chip_gen: v7x
topology: tpu7x:2x2x1
jax: 0.10.0
libtpu: 0.0.40
codegen_flags: <defaults>
</compile_context>

<pallas_src>
import math

import jax
import jax.numpy as jnp
from jax.experimental import pallas as pl
from jax.experimental.pallas import tpu as pltpu


# ----------------------------------------------------------------------------
# Fused Pallas kernel: one batch element per grid step.
#   y = x @ W_blockdiag + (pe + bias)        -> (S, 3*D)
#   out[k*S:(k+1)*S, :] = y[:, k*D:(k+1)*D]  for k in {0, 1, 2}
# ----------------------------------------------------------------------------
def _fused_embed_kernel(x_ref, w_ref, pb_ref, o_ref):
    # x_ref : (1, S, F_total)   w_ref : (F_total, 3*D)
    # pb_ref: (S, 3*D)          o_ref : (1, 3*S, D)
    S = x_ref.shape[1]
    D = o_ref.shape[2]

    # One MXU push for all three projections (block-diagonal weight), then a
    # single fused VPU add of the bias-folded positional embedding.
    y = jnp.dot(x_ref[0], w_ref[...], preferred_element_type=jnp.float32)
    y = y + pb_ref[...]                                        # (S, 3*D) f32

    # Scatter the three D-wide column groups into the three sequence ranges of
    # the output block (this realizes torch.cat(..., dim=1) inside the kernel).
    # Static slices -> no runtime indexing cost; D < 128 lanes -> masked
    # partial stores (see header note).
    for k in range(3):
        o_ref[0, k * S:(k + 1) * S, :] = (
            y[:, k * D:(k + 1) * D].astype(o_ref.dtype))


def _fused_embed(x, w_blk, pe_bias, dim):
    """x: (B, S, F_total); w_blk: (F_total, 3*dim); pe_bias: (S, 3*dim)
       -> (B, 3*S, dim) float32."""
    B, S, F = x.shape
    return pl.pallas_call(
        _fused_embed_kernel,
        out_shape=jax.ShapeDtypeStruct((B, 3 * S, dim), jnp.float32),
        grid_spec=pltpu.PrefetchScalarGridSpec(
            num_scalar_prefetch=0,
            grid=(B,),
            in_specs=[
                pl.BlockSpec((1, S, F), lambda b: (b, 0, 0)),
                pl.BlockSpec((F, 3 * dim), lambda b: (0, 0)),
                pl.BlockSpec((S, 3 * dim), lambda b: (0, 0)),
            ],
            out_specs=pl.BlockSpec((1, 3 * S, dim), lambda b: (b, 0, 0)),
        ),
        compiler_params=pltpu.CompilerParams(
            # B independent grid steps -> both TensorCores get work on v7x;
            # harmless on single-TC v5e/v6e.
            dimension_semantics=("parallel",),
        ),
    )(x, w_blk, pe_bias)


# ----------------------------------------------------------------------------
# Parameter / positional-embedding construction (plain JAX glue, done once;
# under jit with fixed params this constant-folds away).
# ----------------------------------------------------------------------------
def make_positional_embedding(d_model, seq_len):
    """Matches PositionalEmbedding: pe[pos, 0::2]=sin, pe[pos, 1::2]=cos."""
    position = jnp.arange(seq_len, dtype=jnp.float32)[:, None]          # (S, 1)
    div_term = jnp.exp(
        jnp.arange(0, d_model, 2, dtype=jnp.float32)
        * -(math.log(10000.0) / d_model)
    )                                                                    # (D/2,)
    pe = jnp.zeros((seq_len, d_model), dtype=jnp.float32)
    pe = pe.at[:, 0::2].set(jnp.sin(position * div_term))
    pe = pe.at[:, 1::2].set(jnp.cos(position * div_term))
    return pe                                                            # (S, D)


def init_linear(key, in_features, out_features):
    """Deterministic init mimicking nn.Linear default (uniform +/- 1/sqrt(fan_in)).
    Weight stored as (in_features, out_features) so the kernel does x @ W."""
    kw, kb = jax.random.split(key)
    bound = 1.0 / math.sqrt(in_features)
    w = jax.random.uniform(kw, (in_features, out_features),
                           minval=-bound, maxval=bound, dtype=jnp.float32)
    b = jax.random.uniform(kb, (out_features,),
                           minval=-bound, maxval=bound, dtype=jnp.float32)
    return w, b


def _build_fused_params(params, num_control, num_byproduct, num_target, seq_len):
    """Fold the three linears into one block-diagonal weight and fold the three
    biases into the positional embedding (one (S, 3*D) slab)."""
    w_c, b_c = params["control"]
    w_b, b_b = params["byproduct"]
    w_t, b_t = params["target"]
    dim = w_c.shape[1]
    f_total = num_control + num_byproduct + num_target

    w_blk = jnp.zeros((f_total, 3 * dim), dtype=jnp.float32)
    w_blk = w_blk.at[:num_control, 0 * dim:1 * dim].set(w_c)
    w_blk = w_blk.at[num_control:num_control + num_byproduct,
                     1 * dim:2 * dim].set(w_b)
    w_blk = w_blk.at[num_control + num_byproduct:, 2 * dim:3 * dim].set(w_t)

    pe = make_positional_embedding(dim, seq_len)                         # (S, D)
    pe_bias = jnp.concatenate([pe + b_c, pe + b_b, pe + b_t], axis=1)    # (S, 3D)
    return w_blk, pe_bias, dim


def input_embedding_forward(x, params, num_control, num_byproduct, num_target):
    """x: (B, S, num_control+num_byproduct+num_target) -> (B, 3*S, dim)."""
    _, S, _ = x.shape
    w_blk, pe_bias, dim = _build_fused_params(
        params, num_control, num_byproduct, num_target, S)
    return _fused_embed(x, w_blk, pe_bias, dim)


if __name__ == "__main__":
    # Small config consistent with the module's forward.
    B = 2                       # batch
    S = 8                       # look_back / sequence length
    NUM_CONTROL = 4
    NUM_BYPRODUCT = 3
    NUM_TARGET = 5
    DIM = 32

    key = jax.random.PRNGKey(0)
    k_x, k_c, k_b, k_t = jax.random.split(key, 4)

    x = jax.random.normal(
        k_x, (B, S, NUM_CONTROL + NUM_BYPRODUCT + NUM_TARGET), dtype=jnp.float32
    )

    params = {
        "control": init_linear(k_c, NUM_CONTROL, DIM),
        "byproduct": init_linear(k_b, NUM_BYPRODUCT, DIM),
        "target": init_linear(k_t, NUM_TARGET, DIM),
    }

    out = input_embedding_forward(x, params, NUM_CONTROL, NUM_BYPRODUCT, NUM_TARGET)
    out = jax.block_until_ready(out)

    # Sanity check against a plain-JAX reference of the original module.
    pe = make_positional_embedding(DIM, S)
    ref_c = x[:, :, :NUM_CONTROL] @ params["control"][0] + params["control"][1] + pe
    ref_b = (x[:, :, NUM_CONTROL:NUM_CONTROL + NUM_BYPRODUCT]
             @ params["byproduct"][0] + params["byproduct"][1] + pe)
    ref_t = (x[:, :, NUM_CONTROL + NUM_BYPRODUCT:]
             @ params["target"][0] + params["target"][1] + pe)
    ref = jnp.concatenate([ref_c, ref_b, ref_t], axis=1)

    assert out.shape == (B, 3 * S, DIM), out.shape
    assert jnp.allclose(out, ref, atol=1e-5, rtol=1e-5)
    print("KERNEL_OK")
</pallas_src>

<mosaic_0001>
module attributes {stable_mosaic.version = 11 : i64} {
  func.func @_fused_embed_kernel(%arg0: i32, %arg1: memref<1x8x12xf32, #tpu.memory_space<vmem>>, %arg2: memref<12x96xf32, #tpu.memory_space<vmem>>, %arg3: memref<8x96xf32, #tpu.memory_space<vmem>>, %arg4: memref<1x24x32xf32, #tpu.memory_space<vmem>>) attributes {dimension_semantics = [#tpu.dimension_semantics<parallel>], iteration_bounds = array<i64: 2>, scalar_prefetch = 0 : i64, scratch_operands = 0 : i64, tpu.core_type = #tpu.core_type<tc>, window_params = [{transform_indices = @transform_0, window_bounds = array<i64: 1, 8, 12>}, {pipeline_mode = #tpu.pipeline_mode<synchronous>, transform_indices = @transform_1, window_bounds = array<i64: 12, 96>}, {pipeline_mode = #tpu.pipeline_mode<synchronous>, transform_indices = @transform_2, window_bounds = array<i64: 8, 96>}, {transform_indices = @transform_3, window_bounds = array<i64: 1, 24, 32>}]} {
    %c0 = arith.constant 0 : index
    %c0_0 = arith.constant 0 : index
    %c0_1 = arith.constant 0 : index
    %0 = vector.load %arg1[%c0, %c0_0, %c0_1] : memref<1x8x12xf32, #tpu.memory_space<vmem>>, vector<1x8x12xf32>
    %1 = vector.shape_cast %0 : vector<1x8x12xf32> to vector<8x12xf32>
    %c0_2 = arith.constant 0 : index
    %c0_3 = arith.constant 0 : index
    %2 = vector.load %arg2[%c0_2, %c0_3] : memref<12x96xf32, #tpu.memory_space<vmem>>, vector<12x96xf32>
    %cst = arith.constant dense<0.000000e+00> : vector<8x96xf32>
    %3 = tpu.matmul %1, %2, %cst {dimension_numbers = #tpu.dot_dimension_numbers<[1], [0], [0], [1], [0, 0, 1, 1], [], []>} : vector<8x12xf32>, vector<12x96xf32>, vector<8x96xf32> -> vector<8x96xf32>
    %c0_4 = arith.constant 0 : index
    %c0_5 = arith.constant 0 : index
    %4 = vector.load %arg3[%c0_4, %c0_5] : memref<8x96xf32, #tpu.memory_space<vmem>>, vector<8x96xf32>
    %5 = arith.addf %3, %4 : vector<8x96xf32>
    %6 = vector.extract_strided_slice %5 {offsets = [0, 0], sizes = [8, 32], strides = [1, 1]} : vector<8x96xf32> to vector<8x32xf32>
    %c0_6 = arith.constant 0 : index
    %c0_7 = arith.constant 0 : index
    %c0_8 = arith.constant 0 : index
    %7 = vector.load %arg4[%c0_6, %c0_7, %c0_8] : memref<1x24x32xf32, #tpu.memory_space<vmem>>, vector<1x8x32xf32>
    %8 = vector.shape_cast %7 : vector<1x8x32xf32> to vector<8x32xf32>
    %9 = vector.shape_cast %6 : vector<8x32xf32> to vector<1x8x32xf32>
    tpu.vector_store %arg4[%c0_6, %c0_7, %c0_8], %9 {strides = array<i32>} : memref<1x24x32xf32, #tpu.memory_space<vmem>>, vector<1x8x32xf32>,
    %10 = vector.extract_strided_slice %5 {offsets = [0, 32], sizes = [8, 32], strides = [1, 1]} : vector<8x96xf32> to vector<8x32xf32>
    %c0_9 = arith.constant 0 : index
    %c8 = arith.constant 8 : index
    %c0_10 = arith.constant 0 : index
    %11 = vector.load %arg4[%c0_9, %c8, %c0_10] : memref<1x24x32xf32, #tpu.memory_space<vmem>>, vector<1x8x32xf32>
    %12 = vector.shape_cast %11 : vector<1x8x32xf32> to vector<8x32xf32>
    %13 = vector.shape_cast %10 : vector<8x32xf32> to vector<1x8x32xf32>
    tpu.vector_store %arg4[%c0_9, %c8, %c0_10], %13 {strides = array<i32>} : memref<1x24x32xf32, #tpu.memory_space<vmem>>, vector<1x8x32xf32>,
    %14 = vector.extract_strided_slice %5 {offsets = [0, 64], sizes = [8, 32], strides = [1, 1]} : vector<8x96xf32> to vector<8x32xf32>
    %c0_11 = arith.constant 0 : index
    %c16 = arith.constant 16 : index
    %c0_12 = arith.constant 0 : index
    %15 = vector.load %arg4[%c0_11, %c16, %c0_12] : memref<1x24x32xf32, #tpu.memory_space<vmem>>, vector<1x8x32xf32>
    %16 = vector.shape_cast %15 : vector<1x8x32xf32> to vector<8x32xf32>
    %17 = vector.shape_cast %14 : vector<8x32xf32> to vector<1x8x32xf32>
    tpu.vector_store %arg4[%c0_11, %c16, %c0_12], %17 {strides = array<i32>} : memref<1x24x32xf32, #tpu.memory_space<vmem>>, vector<1x8x32xf32>,
    return
  }
  func.func @transform_0(%arg0: i32) -> (i32, i32, i32) {
    %c0_i32 = arith.constant 0 : i32
    %c0_i32_0 = arith.constant 0 : i32
    %c0_i32_1 = arith.constant 0 : i32
    return %arg0, %c0_i32, %c0_i32_0 : i32, i32, i32
  }
  func.func @transform_1(%arg0: i32) -> (i32, i32) {
    %c0_i32 = arith.constant 0 : i32
    %c0_i32_0 = arith.constant 0 : i32
    %c0_i32_1 = arith.constant 0 : i32
    return %c0_i32, %c0_i32_0 : i32, i32
  }
  func.func @transform_2(%arg0: i32) -> (i32, i32) {
    %c0_i32 = arith.constant 0 : i32
    %c0_i32_0 = arith.constant 0 : i32
    %c0_i32_1 = arith.constant 0 : i32
    return %c0_i32, %c0_i32_0 : i32, i32
  }
  func.func @transform_3(%arg0: i32) -> (i32, i32, i32) {
    %c0_i32 = arith.constant 0 : i32
    %c0_i32_0 = arith.constant 0 : i32
    %c0_i32_1 = arith.constant 0 : i32
    return %arg0, %c0_i32, %c0_i32_0 : i32, i32, i32
  }
}

</mosaic_0001>

<bundles_post_ra>
// kernel: tpu_custom_call.1
= control target key start
LH: loop header
LB: loop body
LE: loop exit
PB: predicated region body
PF: predicated region fallthrough
CT: control target
= control target key end

     0   :  { %8 = vsyncpa [#allocation3], 0  ;;  %s948_s0 = inlined_call_operand.hbm [shape: f32[2,8,12], index: 0, kind: input, shape index: {}]   ;;  %s949_s1 = inlined_call_operand.hbm [shape: f32[12,96], index: 1, kind: input, shape index: {}]   ;;  %s950_s2 = inlined_call_operand.hbm [shape: f32[8,96], index: 2, kind: input, shape index: {}]   ;;  %s951_s3 = inlined_call_operand.hbm [shape: f32[2,24,32], index: 3, kind: output, shape index: {}]  }
   0x1   :  { %10 = vsyncpa [#allocation3 + $0x1], 0 }
   0x2   :  { %11 = vsyncpa [#allocation6], 0 }
   0x3   :  { %12 = vsyncpa [#allocation4], 0 }
   0x4   :  { %14 = vsyncpa [#allocation4 + $0x1], 0  ;;  %s713_s12 = smov 0   ;;  %s715_s13 = smov 0  }
   0x5   :  { %s717_s14 = smov 0   ;;  %s719_s15 = smov 0  }
   0x6 LB: > { %s734_s16 = sadd.s32 4294967295, %s677_s15   ;;  %s412_s17 = sadd.s32 4294967294, %s677_s15   ;;  %s677_s15 = sphi %s719_s15, %s971_s15   ;;  %s673_s14 = sphi %s717_s14, %s970_s14   ;;  %s669_s13 = sphi %s715_s13, %s969_s13   ;;  %s665_s12 = sphi %s713_s12, %s968_s12  }
   0x7   : > { %p40_p0 = scmp.ne.s32.totalorder %s669_s13, %s665_s12  ;;  %p952_p1 = scmp.eq.s32.totalorder %s734_s16, 0 }
   0x8   : > { %p112_p3 = scmp.eq.s32.totalorder %s412_s17, 1  ;;  %p413_p5 = scmp.ge.s32.totalorder %s677_s15, 1 }
   0x9   : > { %p743_p4 = por %p952_p1, %p40_p0  ;;  %p119_p7 = scmp.lt.s32.totalorder %s677_s15, 3 }
   0xa   : > { %p748_p6 = por %p112_p3, %p40_p0  ;;  %s679_s21 = smov [#allocation5]  }
   0xb   : > { %s955_s18 = scalar_select %p743_p4, 1, 0 }
   0xc   : > { %s956_s19 = scalar_select %p748_p6, 1, 0 }
   0xd   : > { %p753_p8 = pnand %p413_p5, %p119_p7  ;;  %s131_s22 = sshll.u32 %s679_s21, 4  ;;  %s757_s22 = int_to_ptr.vmem [resolvable:$true] %s131_s22 }
   0xe   : > { %s680_s24 = smov [#allocation7]   ;;  %s521_s28 = scalar_lea.hbm %s949_s1, 256 }
   0xf   : > { %p456_p9 = pneg %p753_p8  ;;  %s145_s25 = sshll.u32 %s680_s24, 4  ;;  %s768_s25 = int_to_ptr.vmem [resolvable:$true] %s145_s25 }
  0x10   : > { %p522_p12 = scmp.ne.s32.totalorder %s949_s1, %s521_s28  ;;  %p528_p5 = scmp.lt.u32.totalorder %s521_s28, %s949_s1 }
  0x11   : > { %p764_p11 = pnand %p456_p9, %p952_p1 }
  0x13   : > { %p523_p13 = pneg %p764_p11 }
  0x15   : > { %p524_p0 = pnand %p523_p13, %p522_p12 }
  0x17   : > { %p525_p3 = pneg %p524_p0 }
  0x19   : > { %p530_p7 = pnand %p528_p5, %p525_p3 }
  0x1b   : > { %533 = shalt.err (!%p530_p7)
}
  0x1c   : > { %s534_s6 = scalar_lea.vmem %s757_s22, 256  ;;  %p542_p2 = scmp.lt.s32.totalorder %s757_s22, %s757_s22 }
  0x1d   : > { %p535_p9 = scmp.ne.s32.totalorder %s757_s22, %s534_s6  ;;  %p543_p12 = scmp.lt.s32.totalorder %s534_s6, %s534_s6 }
  0x1f   : > { %p537_p10 = pnand %p535_p9, %p523_p13  ;;  %p544_p0 = por %p543_p12, %p542_p2 }
  0x21   : > { %p538_p1 = pneg %p537_p10 }
  0x23   : > { %p545_p6 = pnand %p544_p0, %p538_p1 }
  0x25   : > { %548 = shalt.err (!%p545_p6)
}
  0x26   : > { %s681_s7 = smov 128   ;;  %s682_s8 = smov 8  }
  0x27   : > { %459 = dma.hbm_to_vmem [thread:$0]  (!%p764_p11), %s949_s1, 256, %s757_s22, [#allocation6], %s681_s7, %s681_s7, %s682_s8  }
  0x28   : > { %s549_s21 = scalar_lea.hbm %s950_s2, 128 }
  0x29   : > { %p550_p2 = scmp.ne.s32.totalorder %s950_s2, %s549_s21  ;;  %p556_p10 = scmp.lt.u32.totalorder %s549_s21, %s950_s2 }
  0x2b   : > { %p552_p1 = pnand %p550_p2, %p523_p13 }
  0x2d   : > { %p553_p6 = pneg %p552_p1 }
  0x2f   : > { %p558_p3 = pnand %p556_p10, %p553_p6 }
  0x31   : > { %561 = shalt.err (!%p558_p3)
}
  0x32   : > { %s562_s22 = scalar_lea.vmem %s768_s25, 128  ;;  %p570_p12 = scmp.lt.s32.totalorder %s768_s25, %s768_s25 }
  0x33   : > { %p563_p5 = scmp.ne.s32.totalorder %s768_s25, %s562_s22  ;;  %p571_p0 = scmp.lt.s32.totalorder %s562_s22, %s562_s22 }
  0x35   : > { %p565_p7 = pnand %p563_p5, %p523_p13  ;;  %p572_p2 = por %p571_p0, %p570_p12 }
  0x37   : > { %p566_p9 = pneg %p565_p7 }
  0x39   : > { %p573_p1 = pnand %p572_p2, %p566_p9 }
  0x3b   : > { %576 = shalt.err (!%p573_p1)
}
  0x3c   : > { %462 = dma.hbm_to_vmem [thread:$0]  (!%p764_p11), %s950_s2, 128, %s768_s25, [#allocation6]  }
  0x3d   : > { %s823_s4 = sadd.s32 1, %s677_s15   ;;  %s27_s23 = sadd.s32 1, %s673_s14 }
  0x3e   : > { %s24_s5 = ssub.s32 %s677_s15, %s823_s4  ;;  %p34_p13 = scmp.ne.s32.totalorder %s673_s14, %s669_s13 }
  0x3f   : > { %p25_p6 = scmp.eq.s32.totalorder %s24_s5, 0  ;;  %p35_p10 = scmp.eq.s32.totalorder %s677_s15, 0 }
  0x40   : > { %p959_p3 = scmp.eq.s32.totalorder %s734_s16, 1  ;;  %p473_p7 = scmp.lt.s32.totalorder %s677_s15, 2 }
  0x41   : > { %s839_s7 = scalar_select %p25_p6, %s673_s14, %s27_s23  }
  0x42   : > { %p833_p5 = por %p959_p3, %p34_p13  ;;  %p36_p9 = por %p35_p10, %p34_p13 }
  0x43   : > { %s156_s8 = sand.u32 1, %s673_s14   ;;  %s418_s25 = sshll.u32 %s677_s15, 7 }
  0x44   : > { %s960_s6 = scalar_select %p833_p5, 1, 0 }
  0x45   : > { %s417_s9 = sshll.u32 %s156_s8, 3  ;;  %s846_s17 = scalar_lea.hbm %s948_s0, %s418_s25 }
  0x46   : > { %s160_s21 = scalar_lea.vmem [#allocation2], %s417_s9  ;;  %p850_p11 = pnand %p473_p7, %p36_p9 }
  0x47   : > { %s167_s24 = sshll.u32 %s160_s21, 4  ;;  %s157_s27 = scalar_lea.sflag [#allocation3], %s156_s8  ;;  %s848_s24 = int_to_ptr.vmem [resolvable:$true] %s167_s24 }
  0x48   : > { %s577_s28 = scalar_lea.hbm %s846_s17, 128  ;;  %p579_p0 = pneg %p850_p11 }
  0x49   : > { %p578_p12 = scmp.ne.s32.totalorder %s846_s17, %s577_s28  ;;  %s582_s30 = scalar_lea.hbm %s948_s0, 256 }
  0x4a   : > { %p583_p13 = scmp.lt.u32.totalorder %s846_s17, %s948_s0  ;;  %p584_p6 = scmp.lt.u32.totalorder %s582_s30, %s577_s28 }
  0x4b   : > { %p580_p2 = pnand %p579_p0, %p578_p12  ;;  %p586_p3 = scmp.lt.u32.totalorder %s577_s28, %s846_s17 }
  0x4c   : > { %p585_p10 = por %p584_p6, %p583_p13 }
  0x4d   : > { %p581_p1 = pneg %p580_p2 }
  0x4e   : > { %p587_p7 = por %p586_p3, %p585_p10 }
  0x50   : > { %p588_p9 = pnand %p587_p7, %p581_p1 }
  0x52   : > { %591 = shalt.err (!%p588_p9)
}
  0x53   : > { %s592_s8 = scalar_lea.vmem %s848_s24, 128  ;;  %s683_s9 = smov [#allocation2]  }
  0x54   : > { %p593_p12 = scmp.ne.s32.totalorder %s848_s24, %s592_s8  ;;  %s597_s25 = sshll.u32 %s683_s9, 4  ;;  %s598_s25 = int_to_ptr.vmem [resolvable:$false] %s597_s25 }
  0x55   : > { %s599_s10 = scalar_lea.vmem %s598_s25, 256  ;;  %p600_p4 = scmp.lt.s32.totalorder %s848_s24, %s598_s25 }
  0x56   : > { %p595_p2 = pnand %p593_p12, %p579_p0  ;;  %p601_p13 = scmp.lt.s32.totalorder %s599_s10, %s592_s8 }
  0x58   : > { %p596_p5 = pneg %p595_p2  ;;  %p602_p6 = por %p601_p13, %p600_p4 }
  0x5a   : > { %p603_p10 = pnand %p602_p6, %p596_p5 }
  0x5c   : > { %606 = shalt.err (!%p603_p10)
}
  0x5d   : > { %466 = dma.hbm_to_vmem [thread:$0]  (!%p850_p11), %s846_s17, 128, %s848_s24, %s157_s27  }
  0x5e   : > { %176 = sbr.rel (%p753_p8) target bundleno = 460 (0x1cc), region = 32  ;;  %s882_s11 = sand.u32 (!%p753_p8), 1, %s669_s13  }
  0x5f   : > { %s420_s21 = sshll.u32 (!%p753_p8), %s882_s11, 3  ;;  %s179_s28 = scalar_lea.sflag (!%p753_p8), [#allocation3], %s882_s11 }
  0x60   : > { %s182_s22 = scalar_lea.vmem (!%p753_p8), [#allocation2], %s420_s21  ;;  %p962_p4 = scmp.ne.s32.totalorder (!%p753_p8), %s955_s18, 0 }
  0x65   : > { %652 = dma.done.wait (%p962_p4), %s179_s28, 128  }
  0x66   : > { %654 = vsyncadd (%p962_p4), %s179_s28, 4294967168  ;;  %p963_p5 = scmp.eq.s32.totalorder %s734_s16, 0 }
  0x68   : > { %656 = dma.done.wait (%p963_p5), [#allocation6], 384   ;;  %p964_p11 = pmov %p963_p5 }
  0x69   : > { %v684_v0 = vmov 0.0|0.0   ;;  %vm685_vm0 = vmmov 0   ;;  %v686_v1 = vmov 0.0   ;;  %vm221_vm1 = vcmask 1043456   ;;  %v214_v2 = vld [vmem:[#allocation5] sm:$0xff]  ;;  %v213_v5 = vld [vmem:[%s182_s22] sm:$0xff] }
  0x6a   : > { %658 = vsyncadd (%p964_p11), [#allocation6], 4294966912  ;;  %438 = vmatprep.subr.bf16.mxu0 %v684_v0  ;;  %435 = vmatprep.mubr.msk.f32.mxu0 %vm685_vm0, %v686_v1  ;;  %v215_v3 = vld [vmem:[#allocation5 + $0x8] sm:$0xf]  ;;  %vm687_vm2 = vmmov 1   ;;  %vm217_vm4 = vcmask 97280  }
  0x6b   : > { %vm440_vm3 = vmpackc.low %vm221_vm1, %vm687_vm2  ;;  %v439_v4 = vpack.c.bf16 %v215_v3, %v214_v2  ;;  %s442_s18 = smul.u32 24, %s882_s11  ;;  %v216_v6 = vld [vmem:[#allocation7] sm:$0xff]  ;;  %vm295_vm5 = vcmask 261120   ;;  %s688_s20 = smov 96  }
  0x6c   : > { %s689_s24 = smov 64   ;;  %s443_s27 = smul.u32 384, %s734_s16 }
  0x6d   : > { %441 = vmatpush3.bf16.msk.msra.mxu0 %vm440_vm3, %v439_v4  ;;  %s212_s17 = scalar_lea.vmem [#allocation8], %s442_s18  ;;  %s307_s5 = scalar_lea.sflag [#allocation4], %s882_s11 }
  0x6e   : > { %s320_s26 = sshll.u32 %s212_s17, 4  ;;  %s903_s23 = scalar_lea.hbm %s951_s3, %s443_s27  ;;  %s897_s26 = int_to_ptr.vmem [resolvable:$true] %s320_s26 }
  0x6f   : > { %s607_s8 = scalar_lea.vmem %s897_s26, 384  ;;  %p965_p0 = scmp.ne.s32.totalorder %s960_s6, 0 }
  0x70   : > { %436 = vmatmul.mubr.msk.f32.vlgmr.msra.gmra.mrb[0].mxu0 %vm217_vm4, %v213_v5  ;;  %p608_p8 = scmp.ne.s32.totalorder %s897_s26, %s607_s8  ;;  %s690_s16 = smov [#allocation8]  }
  0x71   : > { %s611_s9 = sshll.u32 %s690_s16, 4  ;;  %s612_s9 = int_to_ptr.vmem [resolvable:$false] %s611_s9 }
  0x72   : > { %p609_p1 = pnand %p608_p8, %p965_p0  ;;  %s613_s25 = scalar_lea.vmem %s612_s9, 768 }
  0x73   : > { %p614_p7 = scmp.lt.s32.totalorder %s897_s26, %s612_s9  ;;  %p615_p9 = scmp.lt.s32.totalorder %s613_s25, %s607_s8 }
  0x74   : > { %p610_p3 = pneg %p609_p1 }
  0x75   : > { %p616_p12 = por %p615_p9, %p614_p7 }
  0x77   : > { %p617_p2 = pnand %p616_p12, %p610_p3 }
 0x143   : > { %v291_v7 = vpop.f32.mrb[0].mxu0 }
 0x144   : > { %v292_v8 = vadd.f32 %v291_v7, %v216_v6  ;;  %v437_v9 = vpop.f32.mrb[1].mxu0 }
 0x146   : > { %298 = vrot.lane.b32.xlu0 %v292_v8, %s688_s20  ;;  %296 = vst.msk [vmem:[%s212_s17] sm:$0xff] %vm295_vm5, %v292_v8 }
 0x14a   : > { %302 = vrot.lane.b32.xlu0 %v292_v8, %s689_s24 }
 0x1b8   : > { %v299_v10 = vpop.permute.xlu0 %298 }
 0x1b9   : > { %301 = vst.msk [vmem:[%s212_s17 + $0x8] sm:$0xff] %vm295_vm5, %v299_v10 }
 0x1bc   : > { %v303_v11 = vpop.permute.xlu0 %302 }
 0x1bd   : > { %305 = vst.msk [vmem:[%s212_s17 + $0x10] sm:$0xff] %vm295_vm5, %v303_v11 }
 0x1be   : > { %620 = shalt.err (!%p617_p2)
}
 0x1bf   : > { %s621_s10 = scalar_lea.hbm %s903_s23, 384  ;;  %s625_s22 = scalar_lea.hbm %s951_s3, 768 }
 0x1c0   : > { %p622_p13 = scmp.ne.s32.totalorder %s903_s23, %s621_s10  ;;  %p626_p4 = scmp.lt.u32.totalorder %s903_s23, %s951_s3 }
 0x1c1   : > { %p627_p5 = scmp.lt.u32.totalorder %s625_s22, %s621_s10  ;;  %p629_p8 = scmp.lt.u32.totalorder %s621_s10, %s903_s23 }
 0x1c2   : > { %p623_p6 = pnand %p622_p13, %p965_p0 }
 0x1c3   : > { %p628_p11 = por %p627_p5, %p626_p4 }
 0x1c4   : > { %p624_p10 = pneg %p623_p6 }
 0x1c5   : > { %p630_p1 = por %p629_p8, %p628_p11 }
 0x1c7   : > { %p631_p3 = pnand %p630_p1, %p624_p10 }
 0x1c9   : > { %634 = shalt.err (!%p631_p3)
}
 0x1ca   : > { %s691_s17 = smov 128   ;;  %s692_s24 = smov 8  }
 0x1cb   : > { %454 = dma.vmem_to_hbm [thread:$0]  (%p965_p0), %s897_s26, 384, %s903_s23, %s307_s5, %s691_s17, %s691_s17, %s692_s24  }
 0x1cc PF: > { %s335_s27 = sand.u32 1, %s665_s12   ;;  %p966_p7 = scmp.ne.s32.totalorder %s956_s19, 0 }
 0x1cd   : > { %p967_p9 = scmp.ge.s32.totalorder %s677_s15, 2  ;;  %s336_s29 = scalar_lea.sflag [#allocation4], %s335_s27 }
 0x1cf   : > { %p468_p12 = pnand %p967_p9, %p966_p7 }
 0x1d1   : > { %660 = dma.done.wait (!%p468_p12), %s336_s29, 384  }
 0x1d2   : > { %662 = vsyncadd (!%p468_p12), %s336_s29, 4294966912  ;;  %p17_p2 = scmp.ge.s32.totalorder %s823_s4, 4   ;;  %s968_s12 = smov %s669_s13 }
 0x1d3   : > { %s969_s13 = smov %s673_s14  ;;  %s970_s14 = smov %s839_s7 }
 0x1d4   : > { %s971_s15 = smov %s823_s4  ;;  %19 = sbr.rel (!%p17_p2) target bundleno = 6 (0x6), region = 85 }
 0x1db   :  { %341 = vsyncpa [#allocation3], 1 }
 0x1dc   :  { %343 = vsyncpa [#allocation3 + $0x1], 1 }
 0x1dd   :  { %344 = vsyncpa [#allocation6], 1 }
 0x1de   :  { %345 = vsyncpa [#allocation4], 1 }
 0x1df   :  { %347 = vsyncpa [#allocation4 + $0x1], 1 }

</bundles_post_ra>
